<compile_context>
chip_gen: v5e
topology: v5e:2x2
jax: 0.10.0
libtpu: 0.0.40
codegen_flags: <defaults>
</compile_context>

<pallas_src>
import functools

import jax
import jax.numpy as jnp
from jax.experimental import pallas as pl
from jax.experimental.pallas import tpu as pltpu

_EPS = 1e-5


def _bn_scale_shift(y, gamma, beta, inv_m):
    """Single-pass train-mode BN stats over lanes of y (C, M) -> (C,1) scale/shift."""
    s = jnp.sum(y, axis=1, keepdims=True)
    ss = jnp.sum(y * y, axis=1, keepdims=True)
    mean = s * inv_m
    var = ss * inv_m - mean * mean              # biased variance (train mode)
    scale = gamma * jax.lax.rsqrt(var + _EPS)
    shift = beta - mean * scale
    return scale, shift


def basic_block_kernel(x_ref, mask_ref, w1_ref, ws_ref, w2_ref,
                       g1_ref, b1_ref, gs_ref, bs_ref, g2_ref, b2_ref,
                       out_ref, *, W, M):
    f32, bf16 = jnp.float32, jnp.bfloat16
    inv_m = 1.0 / M

    x = x_ref[...]                      # (Cp, M) f32, channel-major lane-dense
    masks = mask_ref[...]               # (9, M)  f32 0/1 per-tap validity

    def im2col(src):
        """(C, M) lane-dense slab -> (9C, M) bf16 tap-major 3x3 patches.

        Border taps are circular lane rotations (XLU) of the slab, zeroed by
        precomputed validity masks -- no padded scratch copy / zero sweep.
        """
        blocks = []
        for kh in range(3):
            for kw in range(3):
                t = kh * 3 + kw
                d = (kh - 1) * W + (kw - 1)          # flat pixel offset of tap
                if d % M == 0:
                    blocks.append(src)               # center tap: mask all-ones
                else:
                    shifted = pltpu.roll(src, (-d) % M, axis=1)
                    blocks.append(shifted * masks[t:t + 1, :])
        # TODO(synk): on v6e/v7x (bf16 VALU) build blocks directly in bf16 to
        # halve vreg / store pressure of this slab; kept f32 here for v5e and
        # for robust packed-type XLU rotate lowering.
        return jnp.concatenate(blocks, axis=0).astype(bf16)

    # ---- conv1 (3x3, pad 1): one K=9*Cp MXU matmul + train-mode BN + relu ----
    p1 = im2col(x)                                                    # (9Cp, M)
    o1 = jnp.dot(w1_ref[...], p1, preferred_element_type=f32)         # (P, M)
    s1, t1 = _bn_scale_shift(o1, g1_ref[...], b1_ref[...], inv_m)
    h1 = jnp.maximum(o1 * s1 + t1, 0.0)                               # relu(bn1)

    # ---- 1x1 projection shortcut: separate K=Cp matmul off the x slab ----
    osc = jnp.dot(ws_ref[...], x.astype(bf16), preferred_element_type=f32)
    ss, ts = _bn_scale_shift(osc, gs_ref[...], bs_ref[...], inv_m)
    sc = osc * ss + ts                                                # bn_s(conv_s)

    # ---- conv2 (3x3, pad 1) on h1: same roll+mask im2col, K=9P matmul ----
    p2 = im2col(h1)                                                   # (9P, M)
    o2 = jnp.dot(w2_ref[...], p2, preferred_element_type=f32)         # (P, M)
    s2, t2 = _bn_scale_shift(o2, g2_ref[...], b2_ref[...], inv_m)

    # relu( bn2(conv2) + shortcut ), lane-dense (P, M) -> unmasked final store.
    out_ref[...] = jnp.maximum(o2 * s2 + t2 + sc, 0.0)


def basic_block_forward(x, w1, g1, b1, w2, g2, b2, ws, gs, bs):
    """x: (N, Cin, H, W) f32; conv weights in PyTorch OIHW; returns (N, P, H, W)."""
    N, Cin, H, W = x.shape
    P = w1.shape[0]
    M = N * H * W
    Cp = (Cin + 7) // 8 * 8          # pad Cin so tap blocks stay sublane aligned
    f32, bf16 = jnp.float32, jnp.bfloat16

    # ---- layout plumbing only (no compute, no HBM im2col expansion) ----
    x_cm = jnp.transpose(x, (1, 0, 2, 3)).reshape(Cin, M)
    x_cm = jnp.pad(x_cm, ((0, Cp - Cin), (0, 0))).astype(f32)         # (Cp, M)

    # Per-tap zero-padding validity masks (shared by conv1 and conv2), built
    # here so the kernel never runs integer div/mod on its VALU slot.
    m_idx = jnp.arange(M, dtype=jnp.int32)
    h_idx = (m_idx // W) % H
    w_idx = m_idx % W
    masks = jnp.stack([
        ((h_idx + (kh - 1) >= 0) & (h_idx + (kh - 1) < H) &
         (w_idx + (kw - 1) >= 0) & (w_idx + (kw - 1) < W))
        for kh in range(3) for kw in range(3)]).astype(f32)           # (9, M)

    # Weight repacking: tap-major (kh, kw, cin) columns match the im2col rows.
    w1r = jnp.pad(jnp.transpose(w1, (0, 2, 3, 1)),
                  ((0, 0), (0, 0), (0, 0), (0, Cp - Cin))
                  ).reshape(P, 9 * Cp).astype(bf16)                   # (P, 9Cp)
    w2r = jnp.transpose(w2, (0, 2, 3, 1)).reshape(P, 9 * P).astype(bf16)
    wsr = jnp.pad(ws.reshape(P, Cin), ((0, 0), (0, Cp - Cin))).astype(bf16)

    col = lambda v: v.reshape(-1, 1).astype(f32)

    kern = functools.partial(basic_block_kernel, W=W, M=M)
    vmem = pl.BlockSpec(memory_space=pltpu.MemorySpace.VMEM)

    out_t = pl.pallas_call(
        kern,
        out_shape=jax.ShapeDtypeStruct((P, M), f32),
        in_specs=[vmem] * 11,
        out_specs=vmem,
    )(x_cm, masks, w1r, wsr, w2r,
      col(g1), col(b1), col(gs), col(bs), col(g2), col(b2))

    # TODO(synk): when chaining BasicBlocks keep the lane-dense (P, M) layout
    # (optionally bf16) instead of transposing back to NCHW per block.
    return jnp.transpose(out_t.reshape(P, N, H, W), (1, 0, 2, 3))


# ---------------- pure-JAX reference (no Pallas) for verification ----------------
def _ref_bn(y, g, b):
    mean = jnp.mean(y, axis=(0, 2, 3), keepdims=True)
    var = jnp.mean((y - mean) ** 2, axis=(0, 2, 3), keepdims=True)
    return (y - mean) * jax.lax.rsqrt(var + _EPS) * g.reshape(1, -1, 1, 1) \
        + b.reshape(1, -1, 1, 1)


def reference_forward(x, w1, g1, b1, w2, g2, b2, ws, gs, bs):
    dn = ("NCHW", "OIHW", "NCHW")
    hi = jax.lax.Precision.HIGHEST
    y1 = jax.lax.conv_general_dilated(x, w1, (1, 1), ((1, 1), (1, 1)),
                                      dimension_numbers=dn, precision=hi)
    h1 = jnp.maximum(_ref_bn(y1, g1, b1), 0.0)
    y2 = jax.lax.conv_general_dilated(h1, w2, (1, 1), ((1, 1), (1, 1)),
                                      dimension_numbers=dn, precision=hi)
    o2 = _ref_bn(y2, g2, b2)
    sc = _ref_bn(jax.lax.conv_general_dilated(x, ws, (1, 1), ((0, 0), (0, 0)),
                                              dimension_numbers=dn,
                                              precision=hi), gs, bs)
    return jnp.maximum(o2 + sc, 0.0)


if __name__ == "__main__":
    N, Cin, H, W, P = 2, 4, 16, 16, 8   # in_planes=4 != planes=8 -> conv shortcut
    key = jax.random.PRNGKey(0)
    k = jax.random.split(key, 10)
    x = jax.random.normal(k[0], (N, Cin, H, W), jnp.float32)
    w1 = 0.2 * jax.random.normal(k[1], (P, Cin, 3, 3), jnp.float32)
    w2 = 0.2 * jax.random.normal(k[2], (P, P, 3, 3), jnp.float32)
    ws = 0.2 * jax.random.normal(k[3], (P, Cin, 1, 1), jnp.float32)
    g1 = 1.0 + 0.1 * jax.random.normal(k[4], (P,), jnp.float32)
    b1 = 0.1 * jax.random.normal(k[5], (P,), jnp.float32)
    g2 = 1.0 + 0.1 * jax.random.normal(k[6], (P,), jnp.float32)
    b2 = 0.1 * jax.random.normal(k[7], (P,), jnp.float32)
    gs = 1.0 + 0.1 * jax.random.normal(k[8], (P,), jnp.float32)
    bs = 0.1 * jax.random.normal(k[9], (P,), jnp.float32)

    out = jax.block_until_ready(
        basic_block_forward(x, w1, g1, b1, w2, g2, b2, ws, gs, bs))
    ref = reference_forward(x, w1, g1, b1, w2, g2, b2, ws, gs, bs)

    assert out.shape == (N, P, H, W), out.shape
    max_err = float(jnp.max(jnp.abs(out - ref)))
    # bf16 MXU operands / f32 accumulation vs. f32 reference: allow bf16-level
    # absolute error on O(1)-magnitude outputs.
    assert max_err < 5e-2, f"max abs error {max_err}"
    print("KERNEL_OK")
</pallas_src>

<mosaic_0001>
module attributes {stable_mosaic.version = 11 : i64} {
  func.func @basic_block_kernel(%arg0: memref<8x512xf32, #tpu.memory_space<vmem>>, %arg1: memref<9x512xf32, #tpu.memory_space<vmem>>, %arg2: memref<8x72xbf16, #tpu.memory_space<vmem>>, %arg3: memref<8x8xbf16, #tpu.memory_space<vmem>>, %arg4: memref<8x72xbf16, #tpu.memory_space<vmem>>, %arg5: memref<8x1xf32, #tpu.memory_space<vmem>>, %arg6: memref<8x1xf32, #tpu.memory_space<vmem>>, %arg7: memref<8x1xf32, #tpu.memory_space<vmem>>, %arg8: memref<8x1xf32, #tpu.memory_space<vmem>>, %arg9: memref<8x1xf32, #tpu.memory_space<vmem>>, %arg10: memref<8x1xf32, #tpu.memory_space<vmem>>, %arg11: memref<8x512xf32, #tpu.memory_space<vmem>>) attributes {dimension_semantics = [], scalar_prefetch = 0 : i64, scratch_operands = 0 : i64, tpu.core_type = #tpu.core_type<tc>} {
    %c0 = arith.constant 0 : index
    %c0_0 = arith.constant 0 : index
    %0 = vector.load %arg0[%c0, %c0_0] : memref<8x512xf32, #tpu.memory_space<vmem>>, vector<8x512xf32>
    %c0_1 = arith.constant 0 : index
    %c0_2 = arith.constant 0 : index
    %1 = vector.load %arg1[%c0_1, %c0_2] : memref<9x512xf32, #tpu.memory_space<vmem>>, vector<9x512xf32>
    %c17_i32 = arith.constant 17 : i32
    %2 = tpu.dynamic_rotate %0 by %c17_i32 dim 1 : vector<8x512xf32>, i32 -> vector<8x512xf32>
    %3 = vector.extract_strided_slice %1 {offsets = [0, 0], sizes = [1, 512], strides = [1, 1]} : vector<9x512xf32> to vector<1x512xf32>
    %4 = vector.broadcast %3 : vector<1x512xf32> to vector<8x512xf32>
    %5 = arith.mulf %2, %4 : vector<8x512xf32>
    %c16_i32 = arith.constant 16 : i32
    %6 = tpu.dynamic_rotate %0 by %c16_i32 dim 1 : vector<8x512xf32>, i32 -> vector<8x512xf32>
    %7 = vector.extract_strided_slice %1 {offsets = [1, 0], sizes = [1, 512], strides = [1, 1]} : vector<9x512xf32> to vector<1x512xf32>
    %8 = vector.broadcast %7 : vector<1x512xf32> to vector<8x512xf32>
    %9 = arith.mulf %6, %8 : vector<8x512xf32>
    %c15_i32 = arith.constant 15 : i32
    %10 = tpu.dynamic_rotate %0 by %c15_i32 dim 1 : vector<8x512xf32>, i32 -> vector<8x512xf32>
    %11 = vector.extract_strided_slice %1 {offsets = [2, 0], sizes = [1, 512], strides = [1, 1]} : vector<9x512xf32> to vector<1x512xf32>
    %12 = vector.broadcast %11 : vector<1x512xf32> to vector<8x512xf32>
    %13 = arith.mulf %10, %12 : vector<8x512xf32>
    %c1_i32 = arith.constant 1 : i32
    %14 = tpu.dynamic_rotate %0 by %c1_i32 dim 1 : vector<8x512xf32>, i32 -> vector<8x512xf32>
    %15 = vector.extract_strided_slice %1 {offsets = [3, 0], sizes = [1, 512], strides = [1, 1]} : vector<9x512xf32> to vector<1x512xf32>
    %16 = vector.broadcast %15 : vector<1x512xf32> to vector<8x512xf32>
    %17 = arith.mulf %14, %16 : vector<8x512xf32>
    %c511_i32 = arith.constant 511 : i32
    %18 = tpu.dynamic_rotate %0 by %c511_i32 dim 1 : vector<8x512xf32>, i32 -> vector<8x512xf32>
    %19 = vector.extract_strided_slice %1 {offsets = [5, 0], sizes = [1, 512], strides = [1, 1]} : vector<9x512xf32> to vector<1x512xf32>
    %20 = vector.broadcast %19 : vector<1x512xf32> to vector<8x512xf32>
    %21 = arith.mulf %18, %20 : vector<8x512xf32>
    %c497_i32 = arith.constant 497 : i32
    %22 = tpu.dynamic_rotate %0 by %c497_i32 dim 1 : vector<8x512xf32>, i32 -> vector<8x512xf32>
    %23 = vector.extract_strided_slice %1 {offsets = [6, 0], sizes = [1, 512], strides = [1, 1]} : vector<9x512xf32> to vector<1x512xf32>
    %24 = vector.broadcast %23 : vector<1x512xf32> to vector<8x512xf32>
    %25 = arith.mulf %22, %24 : vector<8x512xf32>
    %c496_i32 = arith.constant 496 : i32
    %26 = tpu.dynamic_rotate %0 by %c496_i32 dim 1 : vector<8x512xf32>, i32 -> vector<8x512xf32>
    %27 = vector.extract_strided_slice %1 {offsets = [7, 0], sizes = [1, 512], strides = [1, 1]} : vector<9x512xf32> to vector<1x512xf32>
    %28 = vector.broadcast %27 : vector<1x512xf32> to vector<8x512xf32>
    %29 = arith.mulf %26, %28 : vector<8x512xf32>
    %c495_i32 = arith.constant 495 : i32
    %30 = tpu.dynamic_rotate %0 by %c495_i32 dim 1 : vector<8x512xf32>, i32 -> vector<8x512xf32>
    %31 = vector.extract_strided_slice %1 {offsets = [8, 0], sizes = [1, 512], strides = [1, 1]} : vector<9x512xf32> to vector<1x512xf32>
    %32 = vector.broadcast %31 : vector<1x512xf32> to vector<8x512xf32>
    %33 = arith.mulf %30, %32 : vector<8x512xf32>
    %34 = tpu.concatenate %5, %9, %13, %17, %0, %21, %25, %29, %33 in 0 : vector<8x512xf32>, vector<8x512xf32>, vector<8x512xf32>, vector<8x512xf32>, vector<8x512xf32>, vector<8x512xf32>, vector<8x512xf32>, vector<8x512xf32>, vector<8x512xf32> -> vector<72x512xf32>
    %35 = arith.truncf %34 : vector<72x512xf32> to vector<72x512xbf16>
    %c0_3 = arith.constant 0 : index
    %c0_4 = arith.constant 0 : index
    %36 = vector.load %arg2[%c0_3, %c0_4] : memref<8x72xbf16, #tpu.memory_space<vmem>>, vector<8x72xbf16>
    %cst = arith.constant dense<0.000000e+00> : vector<8x512xf32>
    %37 = tpu.matmul %36, %35, %cst {dimension_numbers = #tpu.dot_dimension_numbers<[1], [0], [0], [1], [0, 0, 1, 1], [], []>} : vector<8x72xbf16>, vector<72x512xbf16>, vector<8x512xf32> -> vector<8x512xf32>
    %c0_5 = arith.constant 0 : index
    %c0_6 = arith.constant 0 : index
    %38 = vector.load %arg5[%c0_5, %c0_6] : memref<8x1xf32, #tpu.memory_space<vmem>>, vector<8x1xf32>
    %c0_7 = arith.constant 0 : index
    %c0_8 = arith.constant 0 : index
    %39 = vector.load %arg6[%c0_7, %c0_8] : memref<8x1xf32, #tpu.memory_space<vmem>>, vector<8x1xf32>
    %cst_9 = arith.constant dense<0.000000e+00> : vector<8xf32>
    %40 = vector.multi_reduction <add>, %37, %cst_9 [1] : vector<8x512xf32> to vector<8xf32>
    %41 = vector.shape_cast %40 : vector<8xf32> to vector<8x1xf32>
    %42 = arith.mulf %37, %37 : vector<8x512xf32>
    %cst_10 = arith.constant dense<0.000000e+00> : vector<8xf32>
    %43 = vector.multi_reduction <add>, %42, %cst_10 [1] : vector<8x512xf32> to vector<8xf32>
    %44 = vector.shape_cast %43 : vector<8xf32> to vector<8x1xf32>
    %cst_11 = arith.constant 0.001953125 : f32
    %45 = vector.broadcast %cst_11 : f32 to vector<8x1xf32>
    %46 = arith.mulf %41, %45 : vector<8x1xf32>
    %cst_12 = arith.constant 0.001953125 : f32
    %47 = vector.broadcast %cst_12 : f32 to vector<8x1xf32>
    %48 = arith.mulf %44, %47 : vector<8x1xf32>
    %49 = arith.mulf %46, %46 : vector<8x1xf32>
    %50 = arith.subf %48, %49 : vector<8x1xf32>
    %cst_13 = arith.constant 9.99999974E-6 : f32
    %51 = vector.broadcast %cst_13 : f32 to vector<8x1xf32>
    %52 = arith.addf %50, %51 : vector<8x1xf32>
    %53 = math.rsqrt %52 : vector<8x1xf32>
    %54 = arith.mulf %38, %53 : vector<8x1xf32>
    %55 = arith.mulf %46, %54 : vector<8x1xf32>
    %56 = arith.subf %39, %55 : vector<8x1xf32>
    %57 = vector.broadcast %54 : vector<8x1xf32> to vector<8x512xf32>
    %58 = arith.mulf %37, %57 : vector<8x512xf32>
    %59 = vector.broadcast %56 : vector<8x1xf32> to vector<8x512xf32>
    %60 = arith.addf %58, %59 : vector<8x512xf32>
    %cst_14 = arith.constant 0.000000e+00 : f32
    %61 = vector.broadcast %cst_14 : f32 to vector<8x512xf32>
    %62 = arith.maximumf %60, %61 : vector<8x512xf32>
    %c0_15 = arith.constant 0 : index
    %c0_16 = arith.constant 0 : index
    %63 = vector.load %arg3[%c0_15, %c0_16] : memref<8x8xbf16, #tpu.memory_space<vmem>>, vector<8x8xbf16>
    %64 = arith.truncf %0 : vector<8x512xf32> to vector<8x512xbf16>
    %cst_17 = arith.constant dense<0.000000e+00> : vector<8x512xf32>
    %65 = tpu.matmul %63, %64, %cst_17 {dimension_numbers = #tpu.dot_dimension_numbers<[1], [0], [0], [1], [0, 0, 1, 1], [], []>} : vector<8x8xbf16>, vector<8x512xbf16>, vector<8x512xf32> -> vector<8x512xf32>
    %c0_18 = arith.constant 0 : index
    %c0_19 = arith.constant 0 : index
    %66 = vector.load %arg7[%c0_18, %c0_19] : memref<8x1xf32, #tpu.memory_space<vmem>>, vector<8x1xf32>
    %c0_20 = arith.constant 0 : index
    %c0_21 = arith.constant 0 : index
    %67 = vector.load %arg8[%c0_20, %c0_21] : memref<8x1xf32, #tpu.memory_space<vmem>>, vector<8x1xf32>
    %cst_22 = arith.constant dense<0.000000e+00> : vector<8xf32>
    %68 = vector.multi_reduction <add>, %65, %cst_22 [1] : vector<8x512xf32> to vector<8xf32>
    %69 = vector.shape_cast %68 : vector<8xf32> to vector<8x1xf32>
    %70 = arith.mulf %65, %65 : vector<8x512xf32>
    %cst_23 = arith.constant dense<0.000000e+00> : vector<8xf32>
    %71 = vector.multi_reduction <add>, %70, %cst_23 [1] : vector<8x512xf32> to vector<8xf32>
    %72 = vector.shape_cast %71 : vector<8xf32> to vector<8x1xf32>
    %cst_24 = arith.constant 0.001953125 : f32
    %73 = vector.broadcast %cst_24 : f32 to vector<8x1xf32>
    %74 = arith.mulf %69, %73 : vector<8x1xf32>
    %cst_25 = arith.constant 0.001953125 : f32
    %75 = vector.broadcast %cst_25 : f32 to vector<8x1xf32>
    %76 = arith.mulf %72, %75 : vector<8x1xf32>
    %77 = arith.mulf %74, %74 : vector<8x1xf32>
    %78 = arith.subf %76, %77 : vector<8x1xf32>
    %cst_26 = arith.constant 9.99999974E-6 : f32
    %79 = vector.broadcast %cst_26 : f32 to vector<8x1xf32>
    %80 = arith.addf %78, %79 : vector<8x1xf32>
    %81 = math.rsqrt %80 : vector<8x1xf32>
    %82 = arith.mulf %66, %81 : vector<8x1xf32>
    %83 = arith.mulf %74, %82 : vector<8x1xf32>
    %84 = arith.subf %67, %83 : vector<8x1xf32>
    %85 = vector.broadcast %82 : vector<8x1xf32> to vector<8x512xf32>
    %86 = arith.mulf %65, %85 : vector<8x512xf32>
    %87 = vector.broadcast %84 : vector<8x1xf32> to vector<8x512xf32>
    %88 = arith.addf %86, %87 : vector<8x512xf32>
    %c17_i32_27 = arith.constant 17 : i32
    %89 = tpu.dynamic_rotate %62 by %c17_i32_27 dim 1 : vector<8x512xf32>, i32 -> vector<8x512xf32>
    %90 = vector.extract_strided_slice %1 {offsets = [0, 0], sizes = [1, 512], strides = [1, 1]} : vector<9x512xf32> to vector<1x512xf32>
    %91 = vector.broadcast %90 : vector<1x512xf32> to vector<8x512xf32>
    %92 = arith.mulf %89, %91 : vector<8x512xf32>
    %c16_i32_28 = arith.constant 16 : i32
    %93 = tpu.dynamic_rotate %62 by %c16_i32_28 dim 1 : vector<8x512xf32>, i32 -> vector<8x512xf32>
    %94 = vector.extract_strided_slice %1 {offsets = [1, 0], sizes = [1, 512], strides = [1, 1]} : vector<9x512xf32> to vector<1x512xf32>
    %95 = vector.broadcast %94 : vector<1x512xf32> to vector<8x512xf32>
    %96 = arith.mulf %93, %95 : vector<8x512xf32>
    %c15_i32_29 = arith.constant 15 : i32
    %97 = tpu.dynamic_rotate %62 by %c15_i32_29 dim 1 : vector<8x512xf32>, i32 -> vector<8x512xf32>
    %98 = vector.extract_strided_slice %1 {offsets = [2, 0], sizes = [1, 512], strides = [1, 1]} : vector<9x512xf32> to vector<1x512xf32>
    %99 = vector.broadcast %98 : vector<1x512xf32> to vector<8x512xf32>
    %100 = arith.mulf %97, %99 : vector<8x512xf32>
    %c1_i32_30 = arith.constant 1 : i32
    %101 = tpu.dynamic_rotate %62 by %c1_i32_30 dim 1 : vector<8x512xf32>, i32 -> vector<8x512xf32>
    %102 = vector.extract_strided_slice %1 {offsets = [3, 0], sizes = [1, 512], strides = [1, 1]} : vector<9x512xf32> to vector<1x512xf32>
    %103 = vector.broadcast %102 : vector<1x512xf32> to vector<8x512xf32>
    %104 = arith.mulf %101, %103 : vector<8x512xf32>
    %c511_i32_31 = arith.constant 511 : i32
    %105 = tpu.dynamic_rotate %62 by %c511_i32_31 dim 1 : vector<8x512xf32>, i32 -> vector<8x512xf32>
    %106 = vector.extract_strided_slice %1 {offsets = [5, 0], sizes = [1, 512], strides = [1, 1]} : vector<9x512xf32> to vector<1x512xf32>
    %107 = vector.broadcast %106 : vector<1x512xf32> to vector<8x512xf32>
    %108 = arith.mulf %105, %107 : vector<8x512xf32>
    %c497_i32_32 = arith.constant 497 : i32
    %109 = tpu.dynamic_rotate %62 by %c497_i32_32 dim 1 : vector<8x512xf32>, i32 -> vector<8x512xf32>
    %110 = vector.extract_strided_slice %1 {offsets = [6, 0], sizes = [1, 512], strides = [1, 1]} : vector<9x512xf32> to vector<1x512xf32>
    %111 = vector.broadcast %110 : vector<1x512xf32> to vector<8x512xf32>
    %112 = arith.mulf %109, %111 : vector<8x512xf32>
    %c496_i32_33 = arith.constant 496 : i32
    %113 = tpu.dynamic_rotate %62 by %c496_i32_33 dim 1 : vector<8x512xf32>, i32 -> vector<8x512xf32>
    %114 = vector.extract_strided_slice %1 {offsets = [7, 0], sizes = [1, 512], strides = [1, 1]} : vector<9x512xf32> to vector<1x512xf32>
    %115 = vector.broadcast %114 : vector<1x512xf32> to vector<8x512xf32>
    %116 = arith.mulf %113, %115 : vector<8x512xf32>
    %c495_i32_34 = arith.constant 495 : i32
    %117 = tpu.dynamic_rotate %62 by %c495_i32_34 dim 1 : vector<8x512xf32>, i32 -> vector<8x512xf32>
    %118 = vector.extract_strided_slice %1 {offsets = [8, 0], sizes = [1, 512], strides = [1, 1]} : vector<9x512xf32> to vector<1x512xf32>
    %119 = vector.broadcast %118 : vector<1x512xf32> to vector<8x512xf32>
    %120 = arith.mulf %117, %119 : vector<8x512xf32>
    %121 = tpu.concatenate %92, %96, %100, %104, %62, %108, %112, %116, %120 in 0 : vector<8x512xf32>, vector<8x512xf32>, vector<8x512xf32>, vector<8x512xf32>, vector<8x512xf32>, vector<8x512xf32>, vector<8x512xf32>, vector<8x512xf32>, vector<8x512xf32> -> vector<72x512xf32>
    %122 = arith.truncf %121 : vector<72x512xf32> to vector<72x512xbf16>
    %c0_35 = arith.constant 0 : index
    %c0_36 = arith.constant 0 : index
    %123 = vector.load %arg4[%c0_35, %c0_36] : memref<8x72xbf16, #tpu.memory_space<vmem>>, vector<8x72xbf16>
    %cst_37 = arith.constant dense<0.000000e+00> : vector<8x512xf32>
    %124 = tpu.matmul %123, %122, %cst_37 {dimension_numbers = #tpu.dot_dimension_numbers<[1], [0], [0], [1], [0, 0, 1, 1], [], []>} : vector<8x72xbf16>, vector<72x512xbf16>, vector<8x512xf32> -> vector<8x512xf32>
    %c0_38 = arith.constant 0 : index
    %c0_39 = arith.constant 0 : index
    %125 = vector.load %arg9[%c0_38, %c0_39] : memref<8x1xf32, #tpu.memory_space<vmem>>, vector<8x1xf32>
    %c0_40 = arith.constant 0 : index
    %c0_41 = arith.constant 0 : index
    %126 = vector.load %arg10[%c0_40, %c0_41] : memref<8x1xf32, #tpu.memory_space<vmem>>, vector<8x1xf32>
    %cst_42 = arith.constant dense<0.000000e+00> : vector<8xf32>
    %127 = vector.multi_reduction <add>, %124, %cst_42 [1] : vector<8x512xf32> to vector<8xf32>
    %128 = vector.shape_cast %127 : vector<8xf32> to vector<8x1xf32>
    %129 = arith.mulf %124, %124 : vector<8x512xf32>
    %cst_43 = arith.constant dense<0.000000e+00> : vector<8xf32>
    %130 = vector.multi_reduction <add>, %129, %cst_43 [1] : vector<8x512xf32> to vector<8xf32>
    %131 = vector.shape_cast %130 : vector<8xf32> to vector<8x1xf32>
    %cst_44 = arith.constant 0.001953125 : f32
    %132 = vector.broadcast %cst_44 : f32 to vector<8x1xf32>
    %133 = arith.mulf %128, %132 : vector<8x1xf32>
    %cst_45 = arith.constant 0.001953125 : f32
    %134 = vector.broadcast %cst_45 : f32 to vector<8x1xf32>
    %135 = arith.mulf %131, %134 : vector<8x1xf32>
    %136 = arith.mulf %133, %133 : vector<8x1xf32>
    %137 = arith.subf %135, %136 : vector<8x1xf32>
    %cst_46 = arith.constant 9.99999974E-6 : f32
    %138 = vector.broadcast %cst_46 : f32 to vector<8x1xf32>
    %139 = arith.addf %137, %138 : vector<8x1xf32>
    %140 = math.rsqrt %139 : vector<8x1xf32>
    %141 = arith.mulf %125, %140 : vector<8x1xf32>
    %142 = arith.mulf %133, %141 : vector<8x1xf32>
    %143 = arith.subf %126, %142 : vector<8x1xf32>
    %144 = vector.broadcast %141 : vector<8x1xf32> to vector<8x512xf32>
    %145 = arith.mulf %124, %144 : vector<8x512xf32>
    %146 = vector.broadcast %143 : vector<8x1xf32> to vector<8x512xf32>
    %147 = arith.addf %145, %146 : vector<8x512xf32>
    %148 = arith.addf %147, %88 : vector<8x512xf32>
    %cst_47 = arith.constant 0.000000e+00 : f32
    %149 = vector.broadcast %cst_47 : f32 to vector<8x512xf32>
    %150 = arith.maximumf %148, %149 : vector<8x512xf32>
    %c0_48 = arith.constant 0 : index
    %c0_49 = arith.constant 0 : index
    %151 = vector.load %arg11[%c0_48, %c0_49] : memref<8x512xf32, #tpu.memory_space<vmem>>, vector<8x512xf32>
    tpu.vector_store %arg11[%c0_48, %c0_49], %150 {strides = array<i32>} : memref<8x512xf32, #tpu.memory_space<vmem>>, vector<8x512xf32>,
    return
  }
}

</mosaic_0001>

<bundles_post_ra>
// kernel: tpu_custom_call.1
= control target key start
LH: loop header
LB: loop body
LE: loop exit
PB: predicated region body
PF: predicated region fallthrough
CT: control target
= control target key end

     0   :  { %16 = vsyncpa [#allocation3], 0  ;;  %s1606_s0 = inlined_call_operand.hbm [shape: f32[8,512], index: 0, kind: input, shape index: {}]   ;;  %s1607_s1 = inlined_call_operand.hbm [shape: f32[9,512], index: 1, kind: input, shape index: {}]   ;;  %s1608_s2 = inlined_call_operand.vmem [shape: bf16[8,72], index: 2, kind: input, shape index: {}]   ;;  %s1609_s3 = inlined_call_operand.vmem [shape: bf16[8,8], index: 3, kind: input, shape index: {}]   ;;  %s1610_s4 = inlined_call_operand.vmem [shape: bf16[8,72], index: 4, kind: input, shape index: {}]   ;;  %s1611_s5 = inlined_call_operand.vmem [shape: f32[8,1], index: 5, kind: input, shape index: {}]   ;;  %s1612_s6 = inlined_call_operand.vmem [shape: f32[8,1], index: 6, kind: input, shape index: {}]   ;;  %s1613_s7 = inlined_call_operand.vmem [shape: f32[8,1], index: 7, kind: input, shape index: {}]   ;;  %s1614_s8 = inlined_call_operand.vmem [shape: f32[8,1], index: 8, kind: input, shape index: {}]   ;;  %s1615_s9 = inlined_call_operand.vmem [shape: f32[8,1], index: 9, kind: input, shape index: {}]   ;;  %s1616_s10 = inlined_call_operand.vmem [shape: f32[8,1], index: 10, kind: input, shape index: {}]   ;;  %s1617_s11 = inlined_call_operand.hbm [shape: f32[8,512], index: 11, kind: output, shape index: {}]  }
   0x1   :  { %17 = vsyncpa [#allocation6], 0 }
   0x2   :  { %18 = vsyncpa [#allocation4], 0  ;;  %s24_s19 = sshll.u32 %s1606_s0, 4  ;;  %s938_s20 = smov [#allocation2]   ;;  %s25_s19 = int_to_ptr.hbm [resolvable:$true] %s24_s19 }
   0x3   :  { %s26_s21 = sshll.u32 %s938_s20, 4  ;;  %s34_s24 = sshll.u32 %s1607_s1, 4  ;;  %s27_s21 = int_to_ptr.vmem [resolvable:$true] %s26_s21  ;;  %s35_s24 = int_to_ptr.hbm [resolvable:$true] %s34_s24 }
   0x4   :  { %29 = dma.hbm_to_vmem [thread:$0]  %s25_s19, 512, %s27_s21, [#allocation3]  }
   0x5   :  { %s939_s25 = smov [#allocation5]   ;;  %s940_s27 = smov 512  }
   0x6   :  { %s36_s26 = sshll.u32 %s939_s25, 4  ;;  %s941_s28 = smov 32   ;;  %s37_s26 = int_to_ptr.vmem [resolvable:$true] %s36_s26 }
   0x7   :  { %42 = dma.hbm_to_vmem [thread:$0]  %s35_s24, 1024, %s37_s26, [#allocation6], %s940_s27, %s940_s27, %s941_s28  }
   0x8   :  { %932 = dma.done.wait [#allocation3], 512  }
   0x9   :  { %933 = vsyncadd [#allocation3], 4294966784 }
   0xa   :  { %934 = dma.done.wait [#allocation6], 1024  }
   0xb   :  { %935 = vsyncadd [#allocation6], 4294966272  ;;  %v1018_v0 = vld [vmem:[#allocation2 + $0x10] sm:$0xff]  ;;  %v1020_v1 = vld [vmem:[#allocation2] sm:$0xff]  ;;  %s942_s0 = smov 113   ;;  %s943_s1 = smov 111   ;;  %v90_v6 = vlaneseq }
   0xc   :  { %193 = vrot.lane.b32.xlu2 %v1018_v0, %s942_s0  ;;  %235 = vrot.lane.b32.xlu0 %v1018_v0, %s943_s1  ;;  %v1028_v2 = vld [vmem:[#allocation2 + $0x18] sm:$0xff]  ;;  %v1030_v3 = vld [vmem:[#allocation2 + $0x8] sm:$0xff]  ;;  %s944_s29 = smov 112   ;;  %s945_s30 = smov 127   ;;  %v1097_v11 = vld [vmem:[#allocation5 + $0x30] ss:$0 sm:$0xff] }
   0xd   :  { %231 = vrot.lane.b32.xlu1 %v1020_v1, %s943_s1  ;;  %s946_s12 = smov 15   ;;  %s947_s13 = smov 1   ;;  %v1094_v10 = vand.u32 127, %v90_v6  ;;  %v1099_v12 = vld [vmem:[#allocation5 + $0x20] ss:$0 sm:$0xff]  ;;  %v1114_v22 = vld [vmem:[#allocation5 + $0x10] sm:$0xff] }
   0xe   :  { %s948_s14 = smov 17   ;;  %s949_s15 = smov 16   ;;  %v1101_v13 = vld [vmem:[#allocation5 + $0x28] ss:$0 sm:$0xff]  ;;  %v1103_v14 = vld [vmem:[#allocation5 + $0x38] ss:$0 sm:$0xff] }
   0xf   :  { %vm239_vm0 = vcmp.lt.s32.totalorder %v1094_v10, 111  ;;  %vm277_vm1 = vcmask 1043456   ;;  %vm197_vm2 = vcmp.lt.s32.totalorder %v1094_v10, 113  ;;  %v204_v31 = vperm.slane %v1114_v22, 6  ;;  %v1134_v42 = vld [vmem:[#allocation5 + $0x18] sm:$0xff]  ;;  %v1160_v60 = vld [vmem:[#allocation5] sm:$0xff] }
  0x10   :  { %vm218_vm3 = vcmp.lt.s32.totalorder %v1094_v10, 112  ;;  %v225_v36 = vperm.slane %v1114_v22, 7  ;;  %v205_v46 = vperm.slane %v1134_v42, 6  ;;  %vm176_vm4 = vcmp.lt.s32.totalorder %v1094_v10, 127  ;;  %v1162_v61 = vld [vmem:[#allocation5 + $0x8] sm:$0xff] }
  0x11   :  { %v184_v47 = vperm.slane %v1134_v42, 5  ;;  %v226_v48 = vperm.slane %v1134_v42, 7  ;;  %v183_v51 = vperm.slane %v1114_v22, 5  ;;  %v203_v6 = vperm.slane %v1162_v61, 6 }
  0x12   :  { %vm134_vm5 = vcmp.lt.s32.totalorder %v1094_v10, 15  ;;  %vm155_vm6 = vcmp.lt.s32.totalorder %v1094_v10, 1  ;;  %vm92_vm7 = vcmp.lt.s32.totalorder %v1094_v10, 17  ;;  %vm113_vm8 = vcmp.lt.s32.totalorder %v1094_v10, 16 }
  0x13   :  { %vm273_vm9 = vcmask 588800   ;;  %vm403_vm13 = vcmask 64512  }
  0x14   :  { %195 = vrot.lane.b32.xlu2 %v1028_v2, %s942_s0  ;;  %237 = vrot.lane.b32.xlu0 %v1028_v2, %s943_s1 }
  0x15   :  { %233 = vrot.lane.b32.xlu1 %v1030_v3, %s943_s1 }
  0x1c   :  { %214 = vrot.lane.b32.xlu0 %v1018_v0, %s944_s29  ;;  %189 = vrot.lane.b32.xlu2 %v1020_v1, %s942_s0 }
  0x1d   :  { %216 = vrot.lane.b32.xlu1 %v1028_v2, %s944_s29 }
  0x24   :  { %210 = vrot.lane.b32.xlu0 %v1020_v1, %s944_s29  ;;  %174 = vrot.lane.b32.xlu2 %v1028_v2, %s945_s30 }
  0x25   :  { %172 = vrot.lane.b32.xlu1 %v1018_v0, %s945_s30 }
  0x2c   :  { %191 = vrot.lane.b32.xlu0 %v1030_v3, %s942_s0  ;;  %168 = vrot.lane.b32.xlu2 %v1020_v1, %s945_s30 }
  0x2d   :  { %212 = vrot.lane.b32.xlu1 %v1030_v3, %s944_s29 }
  0x34   :  { %128 = vrot.lane.b32.xlu0 %v1030_v3, %s946_s12  ;;  %149 = vrot.lane.b32.xlu2 %v1030_v3, %s947_s13 }
  0x35   :  { %130 = vrot.lane.b32.xlu1 %v1018_v0, %s946_s12 }
  0x3c   :  { %151 = vrot.lane.b32.xlu0 %v1018_v0, %s947_s13  ;;  %132 = vrot.lane.b32.xlu2 %v1028_v2, %s946_s12 }
  0x3d   :  { %170 = vrot.lane.b32.xlu1 %v1030_v3, %s945_s30 }
  0x44   :  { %153 = vrot.lane.b32.xlu0 %v1028_v2, %s947_s13  ;;  %86 = vrot.lane.b32.xlu2 %v1018_v0, %s948_s14 }
  0x45   :  { %84 = vrot.lane.b32.xlu1 %v1030_v3, %s948_s14 }
  0x4c   :  { %107 = vrot.lane.b32.xlu0 %v1030_v3, %s949_s15  ;;  %126 = vrot.lane.b32.xlu2 %v1020_v1, %s946_s12 }
  0x4d   :  { %109 = vrot.lane.b32.xlu1 %v1018_v0, %s949_s15 }
  0x54   :  { %147 = vrot.lane.b32.xlu0 %v1020_v1, %s947_s13  ;;  %111 = vrot.lane.b32.xlu2 %v1028_v2, %s949_s15 }
  0x55   :  { %88 = vrot.lane.b32.xlu1 %v1028_v2, %s948_s14 }
  0x5c   :  { %82 = vrot.lane.b32.xlu0 %v1020_v1, %s948_s14 }
  0x5d   :  { %105 = vrot.lane.b32.xlu1 %v1020_v1, %s949_s15 }
  0x66   :  { %v1090_v4 = vpop.permute.xlu2 %193 }
  0x6e   :  { %v196_v5 = vpop.permute.xlu2 %195 }
  0x6f   :  { %v198_v37 = vsel %vm197_vm2, %v1090_v4, %v196_v5 }
  0x70   :  { %v208_v41 = vmul.f32 %v204_v31, %v198_v37  ;;  %v182_v37 = vperm.slane %v1162_v61, 5 }
  0x76   :  { %v1092_v8 = vpop.permute.xlu2 %189 }
  0x77   :  { %v201_v49 = vsel %vm197_vm2, %v196_v5, %v1092_v8  ;;  %v202_v5 = vperm.slane %v1160_v60, 6 }
  0x78   :  { %v209_v55 = vmul.f32 %v205_v46, %v201_v49 }
  0x7e   :  { %v236_v7 = vpop.permute.xlu0 %235  ;;  %v175_v23 = vpop.permute.xlu2 %174 }
  0x7f   :  { %v232_v9 = vpop.permute.xlu1 %231 }
  0x86   :  { %v238_v15 = vpop.permute.xlu0 %237  ;;  %v169_v44 = vpop.permute.xlu2 %168 }
  0x87   :  { %v240_v16 = vsel %vm239_vm0, %v236_v7, %v238_v15  ;;  %v243_v17 = vsel %vm239_vm0, %v238_v15, %v232_v9  ;;  %v234_v18 = vpop.permute.xlu1 %233  ;;  %v180_v50 = vsel %vm176_vm4, %v175_v23, %v169_v44  ;;  %v223_v15 = vperm.slane %v1160_v60, 7 }
  0x88   :  { %v241_v19 = vsel %vm239_vm0, %v234_v18, %v236_v7  ;;  %v242_v20 = vsel %vm239_vm0, %v232_v9, %v234_v18  ;;  %v250_v21 = vmul.f32 %v1097_v11, %v240_v16  ;;  %v251_v26 = vmul.f32 %v1103_v14, %v243_v17 }
  0x89   :  { %v248_v24 = vmul.f32 %v1099_v12, %v242_v20  ;;  %v249_v25 = vmul.f32 %v1101_v13, %v241_v19  ;;  %v188_v56 = vmul.f32 %v184_v47, %v180_v50  ;;  %v224_v16 = vperm.slane %v1162_v61, 7 }
  0x8a   :  { %v270_v27 = vpack.c.bf16 %v250_v21, %v250_v21  ;;  %v271_v30 = vpack.c.bf16 %v251_v26, %v251_v26 }
  0x8b   :  { %v268_v28 = vpack.c.bf16 %v248_v24, %v248_v24  ;;  %v269_v29 = vpack.c.bf16 %v249_v25, %v249_v25  ;;  %v263_v7 = vpack.c.bf16 %v188_v56, %v1028_v2 }
  0x8c   :  { %v285_v32 = vsel %vm277_vm1, %v270_v27, 0  ;;  %v288_v35 = vsel %vm277_vm1, %v271_v30, 0 }
  0x8d   :  { %v279_v33 = vsel %vm277_vm1, %v268_v28, 0  ;;  %v282_v34 = vsel %vm277_vm1, %v269_v29, 0  ;;  %319 = vmatpush.bf16.msra.mxu2 %v285_v32  ;;  %332 = vmatpush.bf16.msra.mxu3 %v288_v35  ;;  %v141_v32 = vperm.slane %v1114_v22, 2  ;;  %v181_v35 = vperm.slane %v1160_v60, 5 }
  0x8e   :  { %293 = vmatpush.bf16.msra.mxu0 %v279_v33  ;;  %306 = vmatpush.bf16.msra.mxu1 %v282_v34  ;;  %v215_v38 = vpop.permute.xlu0 %214  ;;  %v1168_v9 = vpop.permute.xlu2 %149  ;;  %v162_v33 = vperm.slane %v1114_v22, 3 }
  0x8f   :  { %v217_v39 = vpop.permute.xlu1 %216 }
  0x90   :  { %v219_v40 = vsel %vm218_vm3, %v215_v38, %v217_v39 }
  0x91   :  { %v229_v43 = vmul.f32 %v225_v36, %v219_v40 }
  0x93   :  { %v266_v45 = vpack.c.bf16 %v229_v43, %v208_v41 }
  0x95   :  { %320 = vmatpush.bf16.msra.mxu2 %v266_v45 }
  0x96   :  { %v211_v52 = vpop.permute.xlu0 %210  ;;  %v133_v29 = vpop.permute.xlu2 %132 }
  0x97   :  { %v222_v53 = vsel %vm218_vm3, %v217_v39, %v211_v52  ;;  %v173_v54 = vpop.permute.xlu1 %172 }
  0x98   :  { %v230_v57 = vmul.f32 %v226_v48, %v222_v53  ;;  %v177_v58 = vsel %vm176_vm4, %v173_v54, %v175_v23 }
  0x99   :  { %v187_v59 = vmul.f32 %v183_v51, %v177_v58  ;;  %v142_v58 = vperm.slane %v1134_v42, 2 }
  0x9a   :  { %v267_v62 = vpack.c.bf16 %v230_v57, %v209_v55 }
  0x9b   :  { %v262_v63 = vpack.c.bf16 %v187_v59, %v1018_v0 }
  0x9c   :  { %333 = vmatpush.bf16.msra.mxu3 %v267_v62 }
  0x9d   :  { %321 = vmatpush.bf16.msra.mxu2 %v262_v63 }
  0x9e   :  { %v192_v17 = vpop.permute.xlu0 %191  ;;  %v87_v50 = vpop.permute.xlu2 %86 }
  0x9f   :  { %v199_v18 = vsel %vm197_vm2, %v192_v17, %v1090_v4  ;;  %v200_v19 = vsel %vm197_vm2, %v1092_v8, %v192_v17  ;;  %v213_v20 = vpop.permute.xlu1 %212 }
  0xa0   :  { %v206_v21 = vmul.f32 %v202_v5, %v200_v19  ;;  %v207_v23 = vmul.f32 %v203_v6, %v199_v18  ;;  %v220_v24 = vsel %vm218_vm3, %v213_v20, %v215_v38  ;;  %v221_v25 = vsel %vm218_vm3, %v211_v52, %v213_v20  ;;  %334 = vmatpush.bf16.msra.mxu3 %v263_v7 }
  0xa1   :  { %v227_v4 = vmul.f32 %v223_v15, %v221_v25  ;;  %v228_v8 = vmul.f32 %v224_v16, %v220_v24  ;;  %v99_v20 = vperm.slane %v1114_v22, 0 }
  0xa3   :  { %v264_v26 = vpack.c.bf16 %v227_v4, %v206_v21  ;;  %v265_v27 = vpack.c.bf16 %v228_v8, %v207_v23  ;;  %v120_v21 = vperm.slane %v1114_v22, 1 }
  0xa5   :  { %294 = vmatpush.bf16.msra.mxu0 %v264_v26  ;;  %307 = vmatpush.bf16.msra.mxu1 %v265_v27  ;;  %v139_v27 = vperm.slane %v1160_v60, 2 }
  0xa6   :  { %v129_v28 = vpop.permute.xlu0 %128  ;;  %v127_v19 = vpop.permute.xlu2 %126 }
  0xa7   :  { %v131_v30 = vpop.permute.xlu1 %130 }
  0xa8   :  { %v136_v34 = vsel %vm134_vm5, %v129_v28, %v131_v30 }
  0xa9   :  { %v145_v41 = vmul.f32 %v141_v32, %v136_v34 }
  0xae   :  { %v152_v38 = vpop.permute.xlu0 %151 }
  0xaf   :  { %v157_v39 = vsel %vm155_vm6, %v1168_v9, %v152_v38  ;;  %v171_v40 = vpop.permute.xlu1 %170 }
  0xb0   :  { %v166_v43 = vmul.f32 %v162_v33, %v157_v39  ;;  %v178_v45 = vsel %vm176_vm4, %v171_v40, %v173_v54  ;;  %v179_v49 = vsel %vm176_vm4, %v169_v44, %v171_v40  ;;  %v163_v54 = vperm.slane %v1134_v42, 3 }
  0xb1   :  { %v185_v52 = vmul.f32 %v181_v35, %v179_v49  ;;  %v186_v53 = vmul.f32 %v182_v37, %v178_v45  ;;  %v135_v44 = vsel %vm134_vm5, %v131_v30, %v133_v29  ;;  %v112_v30 = vpop.permute.xlu2 %111  ;;  %v138_v39 = vsel %vm134_vm5, %v133_v29, %v127_v19 }
  0xb2   :  { %v258_v55 = vpack.c.bf16 %v166_v43, %v145_v41  ;;  %v146_v7 = vmul.f32 %v142_v58, %v135_v44  ;;  %v160_v40 = vperm.slane %v1160_v60, 3  ;;  %v161_v41 = vperm.slane %v1162_v61, 3 }
  0xb3   :  { %v260_v56 = vpack.c.bf16 %v185_v52, %v1020_v1  ;;  %v261_v57 = vpack.c.bf16 %v186_v53, %v1030_v3  ;;  %v137_v43 = vsel %vm134_vm5, %v127_v19, %v129_v28  ;;  %v121_v45 = vperm.slane %v1134_v42, 1  ;;  %v272_v52 = vld [vmem:[%s1608_s2] sm:$0xf] }
  0xb4   :  { %322 = vmatpush.bf16.msra.mxu2 %v258_v55  ;;  %v100_v49 = vperm.slane %v1134_v42, 0  ;;  %v143_v55 = vmul.f32 %v139_v27, %v138_v39 }
  0xb5   :  { %295 = vmatpush.bf16.msra.mxu0 %v260_v56  ;;  %308 = vmatpush.bf16.msra.mxu1 %v261_v57 }
  0xb6   :  { %v154_v59 = vpop.permute.xlu0 %153 }
  0xb7   :  { %v156_v62 = vsel %vm155_vm6, %v152_v38, %v154_v59  ;;  %v85_v63 = vpop.permute.xlu1 %84  ;;  %v140_v38 = vperm.slane %v1162_v61, 2 }
  0xb8   :  { %v167_v17 = vmul.f32 %v163_v54, %v156_v62  ;;  %v94_v23 = vsel %vm92_vm7, %v85_v63, %v87_v50 }
  0xb9   :  { %v103_v8 = vmul.f32 %v99_v20, %v94_v23  ;;  %v144_v44 = vmul.f32 %v140_v38, %v137_v43 }
  0xba   :  { %v259_v18 = vpack.c.bf16 %v167_v17, %v146_v7 }
  0xbc   :  { %335 = vmatpush.bf16.msra.mxu3 %v259_v18 }
  0xbe   :  { %v108_v24 = vpop.permute.xlu0 %107 }
  0xbf   :  { %v110_v25 = vpop.permute.xlu1 %109 }
  0xc0   :  { %v115_v4 = vsel %vm113_vm8, %v108_v24, %v110_v25  ;;  %v114_v29 = vsel %vm113_vm8, %v110_v25, %v112_v30  ;;  %v97_v25 = vperm.slane %v1160_v60, 0 }
  0xc1   :  { %v124_v26 = vmul.f32 %v120_v21, %v115_v4  ;;  %v98_v4 = vperm.slane %v1162_v61, 0 }
  0xc3   :  { %v254_v34 = vpack.c.bf16 %v124_v26, %v103_v8  ;;  %v1618_v8 = vperm.slane %v1162_v61, 1 }
  0xc5   :  { %323 = vmatpush.bf16.msra.mxu2 %v254_v34 }
  0xc6   :  { %v148_v53 = vpop.permute.xlu0 %147 }
  0xc7   :  { %v158_v28 = vsel %vm155_vm6, %v148_v53, %v1168_v9  ;;  %v159_v56 = vsel %vm155_vm6, %v154_v59, %v148_v53  ;;  %v89_v57 = vpop.permute.xlu1 %88  ;;  %v125_v9 = vmul.f32 %v121_v45, %v114_v29 }
  0xc8   :  { %v164_v62 = vmul.f32 %v160_v40, %v159_v56  ;;  %v165_v7 = vmul.f32 %v161_v41, %v158_v28  ;;  %v93_v17 = vsel %vm92_vm7, %v87_v50, %v89_v57  ;;  %823 = vmatmul.msk.bf16.vlgmr.msra.gmra.mxu2 %vm273_vm9, %v272_v52  ;;  %v118_v50 = vperm.slane %v1160_v60, 1 }
  0xc9   :  { %v104_v59 = vmul.f32 %v100_v49, %v93_v17 }
  0xca   :  { %v256_v18 = vpack.c.bf16 %v164_v62, %v143_v55  ;;  %v257_v19 = vpack.c.bf16 %v165_v7, %v144_v44 }
  0xcb   :  { %v255_v23 = vpack.c.bf16 %v125_v9, %v104_v59 }
  0xcc   :  { %296 = vmatpush.bf16.msra.mxu0 %v256_v18  ;;  %309 = vmatpush.bf16.msra.mxu1 %v257_v19 }
  0xcd   :  { %336 = vmatpush.bf16.msra.mxu3 %v255_v23 }
  0xce   :  { %v83_v26 = vpop.permute.xlu0 %82 }
  0xcf   :  { %v95_v34 = vsel %vm92_vm7, %v83_v26, %v85_v63  ;;  %v96_v39 = vsel %vm92_vm7, %v89_v57, %v83_v26  ;;  %v106_v43 = vpop.permute.xlu1 %105 }
  0xd0   :  { %v101_v29 = vmul.f32 %v97_v25, %v96_v39  ;;  %v102_v53 = vmul.f32 %v98_v4, %v95_v34  ;;  %v116_v55 = vsel %vm113_vm8, %v106_v43, %v108_v24  ;;  %v117_v28 = vsel %vm113_vm8, %v112_v30, %v106_v43  ;;  %824 = vmatmul.msk.bf16.vlgmr.msra.gmra.mxu3 %vm273_vm9, %v272_v52 }
  0xd1   :  { %v122_v63 = vmul.f32 %v118_v50, %v117_v28  ;;  %v123_v56 = vmul.f32 %v1618_v8, %v116_v55 }
  0xd3   :  { %v252_v57 = vpack.c.bf16 %v122_v63, %v101_v29  ;;  %v253_v44 = vpack.c.bf16 %v123_v56, %v102_v53 }
  0xd5   :  { %297 = vmatpush.bf16.msra.mxu0 %v252_v57  ;;  %310 = vmatpush.bf16.msra.mxu1 %v253_v44 }
  0xd8   :  { %821 = vmatmul.msk.bf16.vlgmr.msra.gmra.mxu0 %vm273_vm9, %v272_v52  ;;  %822 = vmatmul.msk.bf16.vlgmr.msra.gmra.mxu1 %vm273_vm9, %v272_v52  ;;  %v950_v52 = vmov 0  }
  0xd9   :  { %847 = vset.pattern.permute.xlu1 %v950_v52  ;;  %848 = vset.pattern.permute.xlu0 %v950_v52 }
  0xda   :  { %849 = vset.pattern.permute.xlu2 %v950_v52 }
 0x14b   :  { %v325_v24 = vpop.f32.mrf.mxu2 }
 0x14c   :  { %v351_v9 = vmul.f32 %v325_v24, %v325_v24 }
 0x153   :  { %v338_v62 = vpop.f32.mrf.mxu3  ;;  %v327_v7 = vpop.f32.mrf.mxu2 }
 0x154   :  { %v352_v26 = vmul.f32 %v338_v62, %v338_v62 }
 0x155   :  { %v299_v30 = vpop.f32.mrf.mxu0  ;;  %v312_v17 = vpop.f32.mrf.mxu1 }
 0x156   :  { %v349_v59 = vmul.f32 %v299_v30, %v299_v30  ;;  %v344_v18 = vadd.f32 %v312_v17, %v299_v30  ;;  %v350_v19 = vmul.f32 %v312_v17, %v312_v17 }
 0x158   :  { %v345_v23 = vadd.f32 %v344_v18, %v325_v24  ;;  %v353_v34 = vadd.f32 %v350_v19, %v349_v59 }
 0x15a   :  { %v346_v39 = vadd.f32 %v345_v23, %v338_v62  ;;  %v354_v43 = vadd.f32 %v353_v34, %v351_v9  ;;  %v342_v34 = vld [vmem:[%s1611_s5] sm:$0xff] }
 0x15b   :  { %v340_v29 = vpop.f32.mrf.mxu3 }
 0x15c   :  { %347 = vadd.xlane.f32.xlu2 %v346_v39  ;;  %v355_v53 = vadd.f32 %v354_v43, %v352_v26 }
 0x15d   :  { %v301_v55 = vpop.f32.mrf.mxu0  ;;  %v314_v28 = vpop.f32.mrf.mxu1 }
 0x15e   :  { %356 = vadd.xlane.f32.xlu0 %v355_v53  ;;  %v343_v55 = vld [vmem:[%s1612_s6] sm:$0xff] }
 0x1cf   :  { %v348_v63 = vpop.xlane.xlu2 %347 }
 0x1d0   :  { %v358_v56 = vmul.f32 0.001953125, %v348_v63 }
 0x1d1   :  { %v357_v57 = vpop.xlane.xlu0 %356 }
 0x1d2   :  { %v360_v44 = vmul.f32 %v358_v56, %v358_v56  ;;  %v359_v7 = vmul.f32 0.001953125, %v357_v57 }
 0x1d4   :  { %v361_v18 = vsub.f32 %v359_v7, %v360_v44 }
 0x1d6   :  { %v362_v8 = vadd.f32 1e-05, %v361_v18 }
 0x1d8   :  { %854 = vrsqrt.f32 %v362_v8  ;;  %vm369_vm11 = vweird.f32 %v362_v8 }
 0x1de   :  { %v855_v59 = vpop.eup %854 }
 0x1df   :  { %v364_v9 = vmul.f32 %v855_v59, %v362_v8  ;;  %vm370_vm10 = vweird.f32 %v855_v59 }
 0x1e0   :  { %vm371_vm12 = vmor %vm369_vm11, %vm370_vm10 }
 0x1e1   :  { %v365_v19 = vmul.f32 %v855_v59, %v364_v9 }
 0x1e3   :  { %v366_v23 = vmul.f32 0.5, %v365_v19 }
 0x1e5   :  { %v367_v26 = vsub.f32 1.5, %v366_v23 }
 0x1e7   :  { %v368_v39 = vmul.f32 %v855_v59, %v367_v26  ;;  %v402_v26 = vpack.c.bf16 %v1028_v2, %v1028_v2 }
 0x1e9   :  { %v372_v43 = vsel %vm371_vm12, %v855_v59, %v368_v39  ;;  %v400_v39 = vpack.c.bf16 %v1030_v3, %v1030_v3 }
 0x1ea   :  { %v373_v29 = vmul.f32 %v372_v43, %v342_v34  ;;  %v417_v34 = vsel %vm277_vm1, %v402_v26, 0  ;;  %v398_v43 = vld [vmem:[%s1609_s3] sm:$0xf] }
 0x1eb   :  { %465 = vmatpush.bf16.msrb.mxu3 %v417_v34 }
 0x1ec   :  { %378 = vperm.xlu1 %847, %v373_v29   ;;  %v374_v53 = vmul.f32 %v373_v29, %v358_v56  ;;  %v411_v29 = vsel %vm277_vm1, %v400_v39, 0 }
 0x1ed   :  { %439 = vmatpush.bf16.msrb.mxu1 %v411_v29 }
 0x1ee   :  { %v375_v28 = vsub.f32 %v343_v55, %v374_v53  ;;  %828 = vmatmul.msk.bf16.vlgmr.msrb.gmra.mxu3 %vm403_vm13, %v398_v43 }
 0x1f0   :  { %826 = vmatmul.msk.bf16.vlgmr.msrb.gmra.mxu1 %vm403_vm13, %v398_v43 }
 0x1f4   :  { %387 = vperm.xlu1 %847, %v375_v28  }
 0x25e   :  { %v379_v52 = vpop.permute.xlu1 %378 }
 0x25f   :  { %v382_v63 = vmul.f32 %v379_v52, %v312_v17  ;;  %v383_v57 = vmul.f32 %v379_v52, %v325_v24  ;;  %v384_v8 = vmul.f32 %v379_v52, %v338_v62  ;;  %v381_v56 = vmul.f32 %v379_v52, %v299_v30 }
 0x260   :  { %v401_v30 = vpack.c.bf16 %v1018_v0, %v1018_v0  ;;  %v399_v0 = vpack.c.bf16 %v1020_v1, %v1020_v1 }
 0x262   :  { %v414_v17 = vsel %vm277_vm1, %v401_v30, 0  ;;  %v408_v2 = vsel %vm277_vm1, %v399_v0, 0 }
 0x263   :  { %452 = vmatpush.bf16.msrb.mxu2 %v414_v17  ;;  %426 = vmatpush.bf16.msrb.mxu0 %v408_v2 }
 0x266   :  { %v388_v44 = vpop.permute.xlu1 %387  ;;  %827 = vmatmul.msk.bf16.vlgmr.msrb.gmra.mxu2 %vm403_vm13, %v398_v43  ;;  %825 = vmatmul.msk.bf16.vlgmr.msrb.gmra.mxu0 %vm403_vm13, %v398_v43 }
 0x267   :  { %v391_v7 = vadd.f32 %v388_v44, %v382_v63  ;;  %v392_v18 = vadd.f32 %v388_v44, %v383_v57  ;;  %v393_v9 = vadd.f32 %v388_v44, %v384_v8  ;;  %v390_v24 = vadd.f32 %v388_v44, %v381_v56 }
 0x269   :  { %v1301_v19 = vmax.f32 %v391_v7, 0.0  ;;  %v1303_v59 = vmax.f32 %v392_v18, 0.0  ;;  %v1305_v23 = vmax.f32 %v393_v9, 0.0  ;;  %v1313_v62 = vmax.f32 %v390_v24, 0.0 }
 0x26b   :  { %609 = vrot.lane.b32.xlu0 %v1305_v23, %s942_s0  ;;  %639 = vrot.lane.b32.xlu1 %v1303_v59, %s943_s1 }
 0x26c   :  { %637 = vrot.lane.b32.xlu2 %v1301_v19, %s943_s1 }
 0x273   :  { %641 = vrot.lane.b32.xlu1 %v1305_v23, %s943_s1  ;;  %619 = vrot.lane.b32.xlu0 %v1313_v62, %s944_s29 }
 0x274   :  { %603 = vrot.lane.b32.xlu2 %v1313_v62, %s942_s0 }
 0x27b   :  { %605 = vrot.lane.b32.xlu0 %v1301_v19, %s942_s0  ;;  %635 = vrot.lane.b32.xlu1 %v1313_v62, %s943_s1 }
 0x27c   :  { %593 = vrot.lane.b32.xlu2 %v1305_v23, %s945_s30 }
 0x283   :  { %557 = vrot.lane.b32.xlu0 %v1301_v19, %s946_s12  ;;  %607 = vrot.lane.b32.xlu1 %v1303_v59, %s942_s0  ;;  %s810_s0 = sshll.u32 %s1617_s11, 4  ;;  %s811_s0 = int_to_ptr.hbm [resolvable:$true] %s810_s0 }
 0x284   :  { %587 = vrot.lane.b32.xlu2 %v1313_v62, %s945_s30 }
 0x28b   :  { %575 = vrot.lane.b32.xlu0 %v1303_v59, %s947_s13  ;;  %623 = vrot.lane.b32.xlu1 %v1303_v59, %s944_s29 }
 0x28c   :  { %573 = vrot.lane.b32.xlu2 %v1301_v19, %s947_s13 }
 0x293   :  { %577 = vrot.lane.b32.xlu0 %v1305_v23, %s947_s13  ;;  %625 = vrot.lane.b32.xlu1 %v1305_v23, %s944_s29 }
 0x294   :  { %561 = vrot.lane.b32.xlu2 %v1305_v23, %s946_s12 }
 0x29b   :  { %541 = vrot.lane.b32.xlu0 %v1301_v19, %s949_s15  ;;  %591 = vrot.lane.b32.xlu1 %v1303_v59, %s945_s30 }
 0x29c   :  { %527 = vrot.lane.b32.xlu2 %v1303_v59, %s948_s14 }
 0x2a3   :  { %571 = vrot.lane.b32.xlu0 %v1313_v62, %s947_s13  ;;  %621 = vrot.lane.b32.xlu1 %v1301_v19, %s944_s29 }
 0x2a4   :  { %555 = vrot.lane.b32.xlu2 %v1313_v62, %s946_s12 }
 0x2ab   :  { %523 = vrot.lane.b32.xlu0 %v1313_v62, %s948_s14  ;;  %559 = vrot.lane.b32.xlu1 %v1303_v59, %s946_s12 }
 0x2ac   :  { %545 = vrot.lane.b32.xlu2 %v1305_v23, %s949_s15 }
 0x2b3   :  { %589 = vrot.lane.b32.xlu1 %v1301_v19, %s945_s30 }
 0x2bb   :  { %525 = vrot.lane.b32.xlu1 %v1301_v19, %s948_s14 }
 0x2c3   :  { %543 = vrot.lane.b32.xlu1 %v1303_v59, %s949_s15 }
 0x2c6   :  { %v638_v1 = vpop.permute.xlu2 %637 }
 0x2cb   :  { %529 = vrot.lane.b32.xlu1 %v1305_v23, %s948_s14 }
 0x2ce   :  { %v604_v18 = vpop.permute.xlu2 %603 }
 0x2d3   :  { %539 = vrot.lane.b32.xlu1 %v1313_v62, %s949_s15 }
 0x2d6   :  { %v594_v39 = vpop.permute.xlu2 %593 }
 0x2dd   :  { %v610_v3 = vpop.permute.xlu0 %609  ;;  %v640_v53 = vpop.permute.xlu1 %639 }
 0x2de   :  { %v644_v55 = vsel %vm239_vm0, %v638_v1, %v640_v53 }
 0x2df   :  { %v648_v28 = vmul.f32 %v1101_v13, %v644_v55 }
 0x2e1   :  { %v668_v52 = vpack.c.bf16 %v648_v28, %v648_v28 }
 0x2e3   :  { %v679_v63 = vsel %vm277_vm1, %v668_v52, 0 }
 0x2e4   :  { %703 = vmatpush.bf16.msra.mxu1 %v679_v63 }
 0x2e5   :  { %v642_v57 = vpop.permute.xlu1 %641  ;;  %v620_v7 = vpop.permute.xlu0 %619 }
 0x2e6   :  { %v643_v8 = vsel %vm239_vm0, %v640_v53, %v642_v57 }
 0x2e7   :  { %v649_v44 = vmul.f32 %v1097_v11, %v643_v8 }
 0x2e9   :  { %v669_v9 = vpack.c.bf16 %v649_v44, %v649_v44 }
 0x2eb   :  { %v682_v56 = vsel %vm277_vm1, %v669_v9, 0 }
 0x2ec   :  { %716 = vmatpush.bf16.msra.mxu2 %v682_v56 }
 0x2ed   :  { %v636_v24 = vpop.permute.xlu1 %635  ;;  %v606_v34 = vpop.permute.xlu0 %605 }
 0x2ee   :  { %v645_v13 = vsel %vm239_vm0, %v636_v24, %v638_v1  ;;  %v646_v30 = vsel %vm239_vm0, %v642_v57, %v636_v24  ;;  %v1406_v1 = vpop.permute.xlu2 %587 }
 0x2ef   :  { %v647_v17 = vmul.f32 %v1099_v12, %v645_v13  ;;  %v650_v26 = vmul.f32 %v1103_v14, %v646_v30  ;;  %v614_v12 = vsel %vm197_vm2, %v610_v3, %v604_v18  ;;  %v598_v63 = vsel %vm176_vm4, %v594_v39, %v1406_v1 }
 0x2f0   :  { %v618_v44 = vmul.f32 %v614_v12, %v205_v46  ;;  %v602_v13 = vmul.f32 %v598_v63, %v184_v47  ;;  %v613_v47 = vsel %vm197_vm2, %v604_v18, %v606_v34 }
 0x2f1   :  { %v667_v0 = vpack.c.bf16 %v647_v17, %v647_v17  ;;  %v670_v11 = vpack.c.bf16 %v650_v26, %v650_v26 }
 0x2f2   :  { %v662_v46 = vpack.c.bf16 %v602_v13, %v1305_v23 }
 0x2f3   :  { %v676_v43 = vsel %vm277_vm1, %v667_v0, 0  ;;  %v685_v2 = vsel %vm277_vm1, %v670_v11, 0 }
 0x2f4   :  { %690 = vmatpush.bf16.msra.mxu0 %v676_v43  ;;  %729 = vmatpush.bf16.msra.mxu3 %v685_v2 }
 0x2f5   :  { %v608_v29 = vpop.permute.xlu1 %607  ;;  %v1404_v53 = vpop.permute.xlu0 %557 }
 0x2f6   :  { %v611_v14 = vsel %vm197_vm2, %v608_v29, %v610_v3  ;;  %v574_v9 = vpop.permute.xlu2 %573  ;;  %v612_v43 = vsel %vm197_vm2, %v606_v34, %v608_v29 }
 0x2f7   :  { %v617_v56 = vmul.f32 %v611_v14, %v204_v31 }
 0x2fd   :  { %v624_v55 = vpop.permute.xlu1 %623  ;;  %v576_v28 = vpop.permute.xlu0 %575 }
 0x2fe   :  { %v562_v11 = vpop.permute.xlu2 %561 }
 0x305   :  { %v626_v52 = vpop.permute.xlu1 %625  ;;  %v578_v31 = vpop.permute.xlu0 %577 }
 0x306   :  { %v627_v57 = vsel %vm218_vm3, %v624_v55, %v626_v52  ;;  %v630_v8 = vsel %vm218_vm3, %v626_v52, %v620_v7 }
 0x307   :  { %v633_v3 = vmul.f32 %v627_v57, %v225_v36  ;;  %v634_v24 = vmul.f32 %v630_v8, %v226_v48 }
 0x309   :  { %v665_v30 = vpack.c.bf16 %v633_v3, %v617_v56  ;;  %v666_v17 = vpack.c.bf16 %v634_v24, %v618_v44 }
 0x30b   :  { %717 = vmatpush.bf16.msra.mxu2 %v665_v30  ;;  %730 = vmatpush.bf16.msra.mxu3 %v666_v17 }
 0x30d   :  { %v592_v26 = vpop.permute.xlu1 %591  ;;  %v1451_v34 = vpop.permute.xlu0 %541 }
 0x30e   :  { %v595_v0 = vsel %vm176_vm4, %v592_v26, %v594_v39 }
 0x30f   :  { %v601_v36 = vmul.f32 %v595_v0, %v183_v51  ;;  %731 = vmatpush.bf16.msra.mxu3 %v662_v46  ;;  %v615_v51 = vmul.f32 %v613_v47, %v202_v5  ;;  %v580_v5 = vsel %vm155_vm6, %v574_v9, %v576_v28  ;;  %v1517_v47 = vpop.f32.mrf.mxu3 }
 0x310   :  { %v585_v52 = vmul.f32 %v580_v5, %v162_v33 }
 0x311   :  { %v661_v48 = vpack.c.bf16 %v601_v36, %v1303_v59  ;;  %v616_v59 = vmul.f32 %v612_v43, %v203_v6  ;;  %v579_v6 = vsel %vm155_vm6, %v576_v28, %v578_v31 }
 0x312   :  { %v586_v63 = vmul.f32 %v579_v6, %v163_v54 }
 0x313   :  { %718 = vmatpush.bf16.msra.mxu2 %v661_v48 }
 0x315   :  { %v622_v2 = vpop.permute.xlu1 %621  ;;  %v572_v56 = vpop.permute.xlu0 %571 }
 0x316   :  { %v628_v23 = vsel %vm218_vm3, %v622_v2, %v624_v55  ;;  %v629_v39 = vsel %vm218_vm3, %v620_v7, %v622_v2  ;;  %v1453_v55 = vpop.permute.xlu2 %527  ;;  %v581_v13 = vsel %vm155_vm6, %v572_v56, %v574_v9  ;;  %v582_v33 = vsel %vm155_vm6, %v578_v31, %v572_v56 }
 0x317   :  { %v631_v12 = vmul.f32 %v629_v39, %v223_v15  ;;  %v632_v18 = vmul.f32 %v628_v23, %v224_v16  ;;  %v584_v46 = vmul.f32 %v581_v13, %v161_v41  ;;  %v481_v39 = vmul.f32 %v1517_v47, %v1517_v47 }
 0x319   :  { %v663_v29 = vpack.c.bf16 %v631_v12, %v615_v51  ;;  %v664_v14 = vpack.c.bf16 %v632_v18, %v616_v59 }
 0x31b   :  { %691 = vmatpush.bf16.msra.mxu0 %v663_v29  ;;  %704 = vmatpush.bf16.msra.mxu1 %v664_v14 }
 0x31d   :  { %v560_v7 = vpop.permute.xlu1 %559 }
 0x31e   :  { %v563_v15 = vsel %vm134_vm5, %v560_v7, %v562_v11  ;;  %v564_v16 = vsel %vm134_vm5, %v1404_v53, %v560_v7  ;;  %v556_v3 = vpop.permute.xlu2 %555 }
 0x31f   :  { %v569_v57 = vmul.f32 %v564_v16, %v141_v32  ;;  %v570_v28 = vmul.f32 %v563_v15, %v142_v58  ;;  %v565_v9 = vsel %vm134_vm5, %v556_v3, %v1404_v53  ;;  %v566_v17 = vsel %vm134_vm5, %v562_v11, %v556_v3 }
 0x320   :  { %v568_v0 = vmul.f32 %v565_v9, %v140_v38 }
 0x321   :  { %v657_v8 = vpack.c.bf16 %v585_v52, %v569_v57  ;;  %v658_v44 = vpack.c.bf16 %v586_v63, %v570_v28  ;;  %v671_v52 = vld [vmem:[%s1610_s4] sm:$0xf] }
 0x322   :  { %v656_v36 = vpack.c.bf16 %v584_v46, %v568_v0 }
 0x323   :  { %719 = vmatpush.bf16.msra.mxu2 %v657_v8  ;;  %732 = vmatpush.bf16.msra.mxu3 %v658_v44  ;;  %v524_v44 = vpop.permute.xlu0 %523 }
 0x325   :  { %v590_v24 = vpop.permute.xlu1 %589 }
 0x326   :  { %v596_v54 = vsel %vm176_vm4, %v590_v24, %v592_v26  ;;  %v597_v32 = vsel %vm176_vm4, %v1406_v1, %v590_v24  ;;  %v583_v26 = vmul.f32 %v582_v33, %v160_v40  ;;  %v1500_v40 = vpop.f32.mrf.mxu0  ;;  %v546_v16 = vpop.permute.xlu2 %545  ;;  %v1619_v33 = vperm.slane %v1162_v61, 1 }
 0x327   :  { %v599_v58 = vmul.f32 %v597_v32, %v181_v35  ;;  %v600_v30 = vmul.f32 %v596_v54, %v182_v37  ;;  %v567_v37 = vmul.f32 %v566_v17, %v139_v27  ;;  %v478_v41 = vmul.f32 %v1500_v40, %v1500_v40 }
 0x329   :  { %v659_v1 = vpack.c.bf16 %v599_v58, %v1313_v62  ;;  %v660_v35 = vpack.c.bf16 %v600_v30, %v1301_v19  ;;  %v655_v31 = vpack.c.bf16 %v583_v26, %v567_v37  ;;  %v1504_v62 = vpop.f32.mrf.mxu1  ;;  %v1510_v19 = vpop.f32.mrf.mxu2 }
 0x32a   :  { %v473_v27 = vadd.f32 %v1504_v62, %v1500_v40  ;;  %v479_v38 = vmul.f32 %v1504_v62, %v1504_v62  ;;  %v480_v11 = vmul.f32 %v1510_v19, %v1510_v19 }
 0x32b   :  { %692 = vmatpush.bf16.msra.mxu0 %v659_v1  ;;  %705 = vmatpush.bf16.msra.mxu1 %v660_v35 }
 0x32c   :  { %v474_v43 = vadd.f32 %v473_v27, %v1510_v19  ;;  %v482_v2 = vadd.f32 %v479_v38, %v478_v41 }
 0x32d   :  { %v526_v53 = vpop.permute.xlu1 %525 }
 0x32e   :  { %v532_v48 = vsel %vm92_vm7, %v526_v53, %v1453_v55  ;;  %v475_v59 = vadd.f32 %v474_v43, %v1517_v47  ;;  %v483_v12 = vadd.f32 %v482_v2, %v480_v11  ;;  %v430_v5 = vpop.f32.mrf.mxu0  ;;  %v533_v56 = vsel %vm92_vm7, %v524_v44, %v526_v53 }
 0x32f   :  { %693 = vmatpush.bf16.msra.mxu0 %v655_v31  ;;  %706 = vmatpush.bf16.msra.mxu1 %v656_v36  ;;  %v537_v18 = vmul.f32 %v532_v48, %v99_v20  ;;  %v469_v20 = vpop.f32.mrf.mxu3  ;;  %v536_v42 = vmul.f32 %v533_v56, %v98_v4 }
 0x330   :  { %476 = vadd.xlane.f32.xlu2 %v475_v59  ;;  %v484_v14 = vadd.f32 %v483_v12, %v481_v39 }
 0x331   :  { %v443_v7 = vpop.f32.mrf.mxu1  ;;  %v456_v15 = vpop.f32.mrf.mxu2 }
 0x332   :  { %485 = vadd.xlane.f32.xlu1 %v484_v14 }
 0x335   :  { %v544_v23 = vpop.permute.xlu1 %543 }
 0x336   :  { %v548_v51 = vsel %vm113_vm8, %v1451_v34, %v544_v23  ;;  %v547_v63 = vsel %vm113_vm8, %v544_v23, %v546_v16 }
 0x337   :  { %v553_v29 = vmul.f32 %v548_v51, %v120_v21  ;;  %v554_v21 = vmul.f32 %v547_v63, %v121_v45 }
 0x339   :  { %v653_v6 = vpack.c.bf16 %v553_v29, %v537_v18  ;;  %v471_v18 = vld [vmem:[%s1613_s7] sm:$0xff] }
 0x33b   :  { %720 = vmatpush.bf16.msra.mxu2 %v653_v6  ;;  %v472_v6 = vld [vmem:[%s1614_s8] sm:$0xff] }
 0x33d   :  { %v530_v57 = vpop.permute.xlu1 %529 }
 0x33e   :  { %v531_v22 = vsel %vm92_vm7, %v1453_v55, %v530_v57  ;;  %831 = vmatmul.msk.bf16.vlgmr.msra.gmra.mxu2 %vm273_vm9, %v671_v52  ;;  %v534_v3 = vsel %vm92_vm7, %v530_v57, %v524_v44 }
 0x33f   :  { %v538_v28 = vmul.f32 %v531_v22, %v100_v49  ;;  %v535_v49 = vmul.f32 %v534_v3, %v97_v25  ;;  %v739_v3 = vld [vmem:[%s1615_s9] sm:$0xff]  ;;  %s951_s9 = smov [#allocation7]  }
 0x341   :  { %v654_v8 = vpack.c.bf16 %v554_v21, %v538_v28 }
 0x343   :  { %733 = vmatpush.bf16.msra.mxu3 %v654_v8 }
 0x345   :  { %v540_v24 = vpop.permute.xlu1 %539 }
 0x346   :  { %v549_v55 = vsel %vm113_vm8, %v540_v24, %v1451_v34  ;;  %v550_v45 = vsel %vm113_vm8, %v546_v16, %v540_v24  ;;  %832 = vmatmul.msk.bf16.vlgmr.msra.gmra.mxu3 %vm273_vm9, %v671_v52 }
 0x347   :  { %v551_v13 = vmul.f32 %v550_v45, %v118_v50  ;;  %v552_v54 = vmul.f32 %v549_v55, %v1619_v33 }
 0x349   :  { %v651_v32 = vpack.c.bf16 %v551_v13, %v535_v49  ;;  %v652_v58 = vpack.c.bf16 %v552_v54, %v536_v42  ;;  %v740_v42 = vld [vmem:[%s1616_s10] sm:$0xff]  ;;  %s808_s10 = sshll.u32 %s951_s9, 4  ;;  %s809_s10 = int_to_ptr.vmem [resolvable:$true] %s808_s10 }
 0x34b   :  { %694 = vmatpush.bf16.msra.mxu0 %v651_v32  ;;  %707 = vmatpush.bf16.msra.mxu1 %v652_v58 }
 0x34e   :  { %829 = vmatmul.msk.bf16.vlgmr.msra.gmra.mxu0 %vm273_vm9, %v671_v52  ;;  %830 = vmatmul.msk.bf16.vlgmr.msra.gmra.mxu1 %vm273_vm9, %v671_v52 }
 0x3a3   :  { %v477_v10 = vpop.xlane.xlu2 %476 }
 0x3a4   :  { %v487_v34 = vmul.f32 0.001953125, %v477_v10 }
 0x3a5   :  { %v486_v4 = vpop.xlane.xlu1 %485 }
 0x3a6   :  { %v489_v30 = vmul.f32 %v487_v34, %v487_v34  ;;  %v488_v9 = vmul.f32 0.001953125, %v486_v4 }
 0x3a8   :  { %v490_v25 = vsub.f32 %v488_v9, %v489_v30 }
 0x3aa   :  { %v491_v17 = vadd.f32 1e-05, %v490_v25 }
 0x3ac   :  { %856 = vrsqrt.f32 %v491_v17  ;;  %vm498_vm14 = vweird.f32 %v491_v17 }
 0x3b2   :  { %v857_v61 = vpop.eup %856 }
 0x3b3   :  { %v493_v1 = vmul.f32 %v857_v61, %v491_v17  ;;  %vm499_vm15 = vweird.f32 %v857_v61 }
 0x3b4   :  { %vm500_vm0 = vmor %vm498_vm14, %vm499_vm15 }
 0x3b5   :  { %v494_v38 = vmul.f32 %v857_v61, %v493_v1 }
 0x3b7   :  { %v495_v23 = vmul.f32 0.5, %v494_v38 }
 0x3b9   :  { %v496_v59 = vsub.f32 1.5, %v495_v23 }
 0x3bb   :  { %v497_v12 = vmul.f32 %v857_v61, %v496_v59 }
 0x3bd   :  { %v501_v29 = vsel %vm500_vm0, %v857_v61, %v497_v12 }
 0x3be   :  { %v502_v14 = vmul.f32 %v501_v29, %v471_v18 }
 0x3c0   :  { %v503_v5 = vmul.f32 %v502_v14, %v487_v34 }
 0x3c1   :  { %v1563_v60 = vpop.f32.mrf.mxu2 }
 0x3c2   :  { %v748_v37 = vmul.f32 %v1563_v60, %v1563_v60  ;;  %v504_v7 = vsub.f32 %v472_v6, %v503_v5 }
 0x3c9   :  { %v1565_v50 = vpop.f32.mrf.mxu3  ;;  %v724_v26 = vpop.f32.mrf.mxu2 }
 0x3ca   :  { %v749_v41 = vmul.f32 %v1565_v50, %v1565_v50 }
 0x3cb   :  { %v1567_v46 = vpop.f32.mrf.mxu1  ;;  %v1569_v35 = vpop.f32.mrf.mxu0 }
 0x3cc   :  { %v747_v0 = vmul.f32 %v1567_v46, %v1567_v46  ;;  %v741_v53 = vadd.f32 %v1567_v46, %v1569_v35  ;;  %v746_v31 = vmul.f32 %v1569_v35, %v1569_v35 }
 0x3ce   :  { %v742_v36 = vadd.f32 %v741_v53, %v1563_v60  ;;  %v750_v27 = vadd.f32 %v747_v0, %v746_v31 }
 0x3d0   :  { %v743_v11 = vadd.f32 %v742_v36, %v1565_v50  ;;  %v751_v48 = vadd.f32 %v750_v27, %v748_v37 }
 0x3d1   :  { %v737_v43 = vpop.f32.mrf.mxu3 }
 0x3d2   :  { %744 = vadd.xlane.f32.xlu0 %v743_v11  ;;  %v752_v2 = vadd.f32 %v751_v48, %v749_v41 }
 0x3d3   :  { %v698_v39 = vpop.f32.mrf.mxu0  ;;  %v711_v51 = vpop.f32.mrf.mxu1 }
 0x3d4   :  { %753 = vadd.xlane.f32.xlu2 %v752_v2 }
 0x3e6   :  { %507 = vperm.xlu0 %848, %v502_v14  }
 0x3ec   :  { %516 = vperm.xlu2 %849, %v504_v7  }
 0x445   :  { %v745_v15 = vpop.xlane.xlu0 %744 }
 0x446   :  { %v755_v16 = vmul.f32 0.001953125, %v745_v15 }
 0x447   :  { %v754_v52 = vpop.xlane.xlu2 %753 }
 0x448   :  { %v757_v63 = vmul.f32 %v755_v16, %v755_v16  ;;  %v756_v20 = vmul.f32 0.001953125, %v754_v52 }
 0x44a   :  { %v758_v57 = vsub.f32 %v756_v20, %v757_v63 }
 0x44c   :  { %v759_v22 = vadd.f32 1e-05, %v758_v57 }
 0x44e   :  { %858 = vrsqrt.f32 %v759_v22  ;;  %vm766_vm2 = vweird.f32 %v759_v22 }
 0x44f   :  { %v517_v33 = vpop.permute.xlu2 %516 }
 0x454   :  { %v859_v21 = vpop.eup %858 }
 0x455   :  { %v761_v28 = vmul.f32 %v859_v21, %v759_v22  ;;  %vm767_vm1 = vweird.f32 %v859_v21 }
 0x456   :  { %vm768_vm3 = vmor %vm766_vm2, %vm767_vm1 }
 0x457   :  { %v762_v8 = vmul.f32 %v859_v21, %v761_v28 }
 0x458   :  { %v508_v54 = vpop.permute.xlu0 %507 }
 0x459   :  { %v763_v44 = vmul.f32 0.5, %v762_v8  ;;  %v510_v32 = vmul.f32 %v508_v54, %v1500_v40  ;;  %v511_v58 = vmul.f32 %v508_v54, %v1504_v62  ;;  %v512_v10 = vmul.f32 %v508_v54, %v1510_v19 }
 0x45a   :  { %v513_v34 = vmul.f32 %v508_v54, %v1517_v47 }
 0x45b   :  { %v764_v56 = vsub.f32 1.5, %v763_v44  ;;  %v519_v61 = vadd.f32 %v517_v33, %v510_v32  ;;  %v520_v26 = vadd.f32 %v517_v33, %v511_v58  ;;  %v521_v1 = vadd.f32 %v517_v33, %v512_v10 }
 0x45c   :  { %v522_v37 = vadd.f32 %v517_v33, %v513_v34 }
 0x45d   :  { %v765_v24 = vmul.f32 %v859_v21, %v764_v56 }
 0x45f   :  { %v769_v55 = vsel %vm768_vm3, %v859_v21, %v765_v24 }
 0x460   :  { %v770_v45 = vmul.f32 %v769_v55, %v739_v3 }
 0x462   :  { %775 = vperm.xlu1 %847, %v770_v45   ;;  %v771_v49 = vmul.f32 %v770_v45, %v755_v16 }
 0x464   :  { %v772_v13 = vsub.f32 %v740_v42, %v771_v49 }
 0x466   :  { %784 = vperm.xlu2 %849, %v772_v13  }
 0x4c0   :  { %v785_v40 = vpop.permute.xlu2 %784 }
 0x4d4   :  { %v776_v4 = vpop.permute.xlu1 %775 }
 0x4d5   :  { %v778_v30 = vmul.f32 %v776_v4, %v1569_v35  ;;  %v779_v9 = vmul.f32 %v776_v4, %v1567_v46  ;;  %v780_v25 = vmul.f32 %v776_v4, %v1563_v60  ;;  %v781_v17 = vmul.f32 %v776_v4, %v1565_v50 }
 0x4d7   :  { %v787_v0 = vadd.f32 %v785_v40, %v778_v30  ;;  %v788_v62 = vadd.f32 %v785_v40, %v779_v9  ;;  %v789_v53 = vadd.f32 %v785_v40, %v780_v25  ;;  %v790_v19 = vadd.f32 %v785_v40, %v781_v17 }
 0x4d9   :  { %v791_v31 = vadd.f32 %v787_v0, %v519_v61  ;;  %v792_v47 = vadd.f32 %v788_v62, %v520_v26  ;;  %v793_v36 = vadd.f32 %v789_v53, %v521_v1  ;;  %v794_v41 = vadd.f32 %v790_v19, %v522_v37 }
 0x4db   :  { %v795_v35 = vmax.f32 %v791_v31, 0.0  ;;  %v796_v27 = vmax.f32 %v792_v47, 0.0  ;;  %v797_v46 = vmax.f32 %v793_v36, 0.0  ;;  %v798_v60 = vmax.f32 %v794_v41, 0.0 }
 0x4dd   :  { %799 = vst [vmem:[#allocation7] sm:$0xff] %v795_v35 }
 0x4de   :  { %800 = vst [vmem:[#allocation7 + $0x8] sm:$0xff] %v796_v27 }
 0x4df   :  { %801 = vst [vmem:[#allocation7 + $0x10] sm:$0xff] %v797_v46 }
 0x4e0   :  { %802 = vst [vmem:[#allocation7 + $0x18] sm:$0xff] %v798_v60 }
 0x4e1   :  { %813 = dma.vmem_to_hbm [thread:$0]  %s809_s10, 512, %s811_s0, [#allocation4]  }
 0x4e2   :  { %936 = dma.done.wait [#allocation4], 512  }
 0x4e3   :  { %937 = vsyncadd [#allocation4], 4294966784 }
 0x4e4   :  { %818 = vsyncpa [#allocation3], 1 }
 0x4e5   :  { %819 = vsyncpa [#allocation6], 1 }
 0x4e6   :  { %820 = vsyncpa [#allocation4], 1 }

</bundles_post_ra>
